<compile_context>
chip_gen: v5e
topology: v5e:2x2
jax: 0.10.0
libtpu: 0.0.40
codegen_flags: <defaults>
</compile_context>

<pallas_src>
import jax
import jax.numpy as jnp
from jax import lax
from jax.experimental import pallas as pl
from jax.experimental.pallas import tpu as pltpu

IN_FEATURES = 112   # 7 * 16 (nn.Flatten)
H1 = 256
H2 = 128
OUT_FEATURES = 4
OUT_PAD = 8         # pad 4 -> 8 output rows: transposed output tile is (8, tile_b)


def _round_up(x, m):
    return ((x + m - 1) // m) * m


def _choose_tiling(batch, tile_max=2048):
    """Pick (tile_b, b_pad) with b_pad == tile_b * num_grid_steps.

    * batch <= 128: single grid step, block == full array (legal even when the
      batch is not a multiple of 128).
    * batch  > 128: >= 2 grid steps so v7x's two TensorCores split the batch;
      tile_b is a multiple of 128 (batch is the output lane dim) and capped at
      tile_max so double-buffered tiles stay far under VMEM limits on all of
      v5e (16 MiB scoped default) / v6e / v7x (64 MiB physical).
    """
    if batch <= 128:
        b = _round_up(batch, 8)
        return b, b
    n_steps = max(2, pl.cdiv(batch, tile_max))
    tile_b = min(tile_max, _round_up(pl.cdiv(batch, n_steps), 128))
    n_steps = pl.cdiv(batch, tile_b)
    return tile_b, tile_b * n_steps


def dqn_kernel(x_ref, w1_ref, b1_ref, w2_ref, b2_ref, w3t_ref, b3_ref, o_ref):
    # x_ref: (tile_b, 112) bf16; w1: (112,256) bf16; w2: (256,128) bf16;
    # w3t: (8,128) bf16 (transposed, out-major); biases f32; o_ref: (8, tile_b) f32.
    x = x_ref[...]

    # Layer 1: bf16 MXU matmul (K=112 handled natively), f32 accumulate,
    # f32 bias + ReLU on the VPU.
    h1 = jnp.dot(x, w1_ref[...], preferred_element_type=jnp.float32) + b1_ref[...]
    h1 = jnp.maximum(h1, 0.0)

    # Layer 2.
    h2 = jnp.dot(h1.astype(jnp.bfloat16), w2_ref[...],
                 preferred_element_type=jnp.float32) + b2_ref[...]
    h2 = jnp.maximum(h2, 0.0)

    # Layer 3, emitted transposed: out_t[o, b] = sum_k w3[k, o] * h2[b, k].
    # rhs-transposed contraction (same pattern as q @ k^T) -> no explicit
    # transpose op; result (8, tile_b) keeps stores lane-dense with a tiny slab.
    out_t = lax.dot_general(
        w3t_ref[...], h2.astype(jnp.bfloat16),
        dimension_numbers=(((1,), (1,)), ((), ())),
        preferred_element_type=jnp.float32)
    o_ref[...] = out_t + b3_ref[...]


def prepare_params(params):
    """One-time reformat: bf16 casts + layer-3 transpose/pad (hoisted out of the
    per-call forward path)."""
    w1, b1, w2, b2, w3, b3 = params
    w3t = jnp.zeros((OUT_PAD, H2), jnp.float32).at[:OUT_FEATURES].set(w3.T)
    b3c = jnp.zeros((OUT_PAD, 1), jnp.float32).at[:OUT_FEATURES, 0].set(
        jnp.reshape(b3, (-1,)))
    return (w1.astype(jnp.bfloat16), b1.astype(jnp.float32),
            w2.astype(jnp.bfloat16), b2.astype(jnp.float32),
            w3t.astype(jnp.bfloat16), b3c.astype(jnp.float32))


def dqn_forward(x, prepared_params, tile_max=2048):
    """x: (B, 7, 16) (or anything flattening to 112). Returns (B, 4) Q-values."""
    w1, b1, w2, b2, w3t, b3 = prepared_params
    B = x.shape[0]

    # Single reshape + bf16 cast (one HBM pass); no K padding needed.
    x_bf = jnp.reshape(x, (B, -1)).astype(jnp.bfloat16)
    assert x_bf.shape[1] == IN_FEATURES, x_bf.shape

    tile_b, b_pad = _choose_tiling(B, tile_max)
    if b_pad != B:
        x_bf = jnp.pad(x_bf, ((0, b_pad - B), (0, 0)))

    grid = (b_pad // tile_b,)
    const = lambda i: (0, 0)   # weights/biases stay VMEM-resident across grid steps

    flops = 2 * b_pad * (IN_FEATURES * H1 + H1 * H2 + H2 * OUT_PAD)
    bytes_accessed = (
        x_bf.size * 2 + w1.size * 2 + w2.size * 2 + w3t.size * 2
        + b1.size * 4 + b2.size * 4 + b3.size * 4
        + OUT_PAD * b_pad * 4
    )

    out_t = pl.pallas_call(
        dqn_kernel,
        out_shape=jax.ShapeDtypeStruct((OUT_PAD, b_pad), jnp.float32),
        grid=grid,
        in_specs=[
            pl.BlockSpec((tile_b, IN_FEATURES), lambda i: (i, 0)),  # x: batch-tiled
            pl.BlockSpec((IN_FEATURES, H1), const),                 # w1 resident
            pl.BlockSpec((1, H1), const),                           # b1 resident
            pl.BlockSpec((H1, H2), const),                          # w2 resident
            pl.BlockSpec((1, H2), const),                           # b2 resident
            pl.BlockSpec((OUT_PAD, H2), const),                     # w3^T resident
            pl.BlockSpec((OUT_PAD, 1), const),                      # b3 resident
        ],
        out_specs=pl.BlockSpec((OUT_PAD, tile_b), lambda i: (0, i)),
        compiler_params=pltpu.CompilerParams(
            dimension_semantics=("parallel",),   # v7x: 2 TCs split the batch grid
        ),
        cost_estimate=pl.CostEstimate(
            flops=flops, transcendentals=0, bytes_accessed=bytes_accessed),
    )(x_bf, w1, b1, w2, b2, w3t, b3)

    # (8, b_pad) -> (B, 4): slice off out/batch padding and undo the transpose.
    return out_t[:OUT_FEATURES, :B].T


def init_params(key):
    """Deterministic init matching PyTorch nn.Linear shapes.

    PyTorch stores weight as (out, in); we keep (in, out) so the math is
    x @ W + b (equivalent to x @ W_pt.T + b).
    """
    ks = jax.random.split(key, 6)

    def linear(kw, kb, fan_in, fan_out):
        bound = 1.0 / jnp.sqrt(fan_in)
        w = jax.random.uniform(kw, (fan_in, fan_out), jnp.float32, -bound, bound)
        b = jax.random.uniform(kb, (1, fan_out), jnp.float32, -bound, bound)
        return w, b

    w1, b1 = linear(ks[0], ks[1], IN_FEATURES, H1)
    w2, b2 = linear(ks[2], ks[3], H1, H2)
    w3, b3 = linear(ks[4], ks[5], H2, OUT_FEATURES)
    return (w1, b1, w2, b2, w3, b3)


def dqn_reference(x, params):
    """Pure-JAX f32 reference (PyTorch-equivalent forward)."""
    w1, b1, w2, b2, w3, b3 = params
    h = jnp.reshape(x, (x.shape[0], -1)).astype(jnp.float32)
    h = jnp.maximum(h @ w1 + b1, 0.0)
    h = jnp.maximum(h @ w2 + b2, 0.0)
    return h @ w3 + b3


if __name__ == "__main__":
    key = jax.random.PRNGKey(0)
    k_x, k_p = jax.random.split(key)

    params = init_params(k_p)
    prepared = prepare_params(params)   # one-time cast/pad, not per-forward

    # Small batch (single grid step): the action-selection case.
    x_small = jax.random.normal(k_x, (8, 7, 16), dtype=jnp.float32)
    out_small = jax.block_until_ready(dqn_forward(x_small, prepared))
    ref_small = dqn_reference(x_small, params)
    assert out_small.shape == (8, OUT_FEATURES), out_small.shape
    # bf16 matmul operands with f32 accumulation -> relaxed tolerance vs f32 ref.
    assert jnp.allclose(out_small, ref_small, atol=5e-2, rtol=5e-2), \
        "mismatch vs JAX reference (small batch)"

    # Larger batch (multi-step grid + batch-row padding): the replay-buffer case.
    x_big = jax.random.normal(k_x, (200, 7, 16), dtype=jnp.float32)
    out_big = jax.block_until_ready(dqn_forward(x_big, prepared))
    ref_big = dqn_reference(x_big, params)
    assert out_big.shape == (200, OUT_FEATURES), out_big.shape
    assert jnp.allclose(out_big, ref_big, atol=5e-2, rtol=5e-2), \
        "mismatch vs JAX reference (large batch)"

    print("KERNEL_OK")
</pallas_src>

<mosaic_0001>
module attributes {stable_mosaic.version = 11 : i64} {
  func.func @dqn_kernel(%arg0: i32, %arg1: memref<8x112xbf16, #tpu.memory_space<vmem>>, %arg2: memref<112x256xbf16, #tpu.memory_space<vmem>>, %arg3: memref<1x256xf32, #tpu.memory_space<vmem>>, %arg4: memref<256x128xbf16, #tpu.memory_space<vmem>>, %arg5: memref<1x128xf32, #tpu.memory_space<vmem>>, %arg6: memref<8x128xbf16, #tpu.memory_space<vmem>>, %arg7: memref<8x1xf32, #tpu.memory_space<vmem>>, %arg8: memref<8x8xf32, #tpu.memory_space<vmem>>) attributes {dimension_semantics = [#tpu.dimension_semantics<parallel>], iteration_bounds = array<i64: 1>, scalar_prefetch = 0 : i64, scratch_operands = 0 : i64, tpu.core_type = #tpu.core_type<tc>, window_params = [{transform_indices = @transform_0, window_bounds = array<i64: 8, 112>}, {pipeline_mode = #tpu.pipeline_mode<synchronous>, transform_indices = @transform_1, window_bounds = array<i64: 112, 256>}, {pipeline_mode = #tpu.pipeline_mode<synchronous>, transform_indices = @transform_2, window_bounds = array<i64: 1, 256>}, {pipeline_mode = #tpu.pipeline_mode<synchronous>, transform_indices = @transform_3, window_bounds = array<i64: 256, 128>}, {pipeline_mode = #tpu.pipeline_mode<synchronous>, transform_indices = @transform_4, window_bounds = array<i64: 1, 128>}, {pipeline_mode = #tpu.pipeline_mode<synchronous>, transform_indices = @transform_5, window_bounds = array<i64: 8, 128>}, {pipeline_mode = #tpu.pipeline_mode<synchronous>, transform_indices = @transform_6, window_bounds = array<i64: 8, 1>}, {transform_indices = @transform_7, window_bounds = array<i64: 8, 8>}]} {
    %c0 = arith.constant 0 : index
    %c0_0 = arith.constant 0 : index
    %0 = vector.load %arg1[%c0, %c0_0] : memref<8x112xbf16, #tpu.memory_space<vmem>>, vector<8x112xbf16>
    %c0_1 = arith.constant 0 : index
    %c0_2 = arith.constant 0 : index
    %1 = vector.load %arg2[%c0_1, %c0_2] : memref<112x256xbf16, #tpu.memory_space<vmem>>, vector<112x256xbf16>
    %cst = arith.constant dense<0.000000e+00> : vector<8x256xf32>
    %2 = tpu.matmul %0, %1, %cst {dimension_numbers = #tpu.dot_dimension_numbers<[1], [0], [0], [1], [0, 0, 1, 1], [], []>} : vector<8x112xbf16>, vector<112x256xbf16>, vector<8x256xf32> -> vector<8x256xf32>
    %c0_3 = arith.constant 0 : index
    %c0_4 = arith.constant 0 : index
    %3 = vector.load %arg3[%c0_3, %c0_4] : memref<1x256xf32, #tpu.memory_space<vmem>>, vector<1x256xf32>
    %4 = vector.broadcast %3 : vector<1x256xf32> to vector<8x256xf32>
    %5 = arith.addf %2, %4 : vector<8x256xf32>
    %cst_5 = arith.constant 0.000000e+00 : f32
    %6 = vector.broadcast %cst_5 : f32 to vector<8x256xf32>
    %7 = arith.maximumf %5, %6 : vector<8x256xf32>
    %8 = arith.truncf %7 : vector<8x256xf32> to vector<8x256xbf16>
    %c0_6 = arith.constant 0 : index
    %c0_7 = arith.constant 0 : index
    %9 = vector.load %arg4[%c0_6, %c0_7] : memref<256x128xbf16, #tpu.memory_space<vmem>>, vector<256x128xbf16>
    %cst_8 = arith.constant dense<0.000000e+00> : vector<8x128xf32>
    %10 = tpu.matmul %8, %9, %cst_8 {dimension_numbers = #tpu.dot_dimension_numbers<[1], [0], [0], [1], [0, 0, 1, 1], [], []>} : vector<8x256xbf16>, vector<256x128xbf16>, vector<8x128xf32> -> vector<8x128xf32>
    %c0_9 = arith.constant 0 : index
    %c0_10 = arith.constant 0 : index
    %11 = vector.load %arg5[%c0_9, %c0_10] : memref<1x128xf32, #tpu.memory_space<vmem>>, vector<1x128xf32>
    %12 = vector.broadcast %11 : vector<1x128xf32> to vector<8x128xf32>
    %13 = arith.addf %10, %12 : vector<8x128xf32>
    %cst_11 = arith.constant 0.000000e+00 : f32
    %14 = vector.broadcast %cst_11 : f32 to vector<8x128xf32>
    %15 = arith.maximumf %13, %14 : vector<8x128xf32>
    %c0_12 = arith.constant 0 : index
    %c0_13 = arith.constant 0 : index
    %16 = vector.load %arg6[%c0_12, %c0_13] : memref<8x128xbf16, #tpu.memory_space<vmem>>, vector<8x128xbf16>
    %17 = arith.truncf %15 : vector<8x128xf32> to vector<8x128xbf16>
    %cst_14 = arith.constant dense<0.000000e+00> : vector<8x8xf32>
    %18 = tpu.matmul %16, %17, %cst_14 {dimension_numbers = #tpu.dot_dimension_numbers<[1], [1], [0], [0], [0, 0, 1, 0], [], []>} : vector<8x128xbf16>, vector<8x128xbf16>, vector<8x8xf32> -> vector<8x8xf32>
    %c0_15 = arith.constant 0 : index
    %c0_16 = arith.constant 0 : index
    %19 = vector.load %arg7[%c0_15, %c0_16] : memref<8x1xf32, #tpu.memory_space<vmem>>, vector<8x1xf32>
    %20 = vector.broadcast %19 : vector<8x1xf32> to vector<8x8xf32>
    %21 = arith.addf %18, %20 : vector<8x8xf32>
    %c0_17 = arith.constant 0 : index
    %c0_18 = arith.constant 0 : index
    %22 = vector.load %arg8[%c0_17, %c0_18] : memref<8x8xf32, #tpu.memory_space<vmem>>, vector<8x8xf32>
    tpu.vector_store %arg8[%c0_17, %c0_18], %21 {strides = array<i32>} : memref<8x8xf32, #tpu.memory_space<vmem>>, vector<8x8xf32>,
    return
  }
  func.func @transform_0(%arg0: i32) -> (i32, i32) {
    %c0_i32 = arith.constant 0 : i32
    %c0_i32_0 = arith.constant 0 : i32
    return %arg0, %c0_i32 : i32, i32
  }
  func.func @transform_1(%arg0: i32) -> (i32, i32) {
    %c0_i32 = arith.constant 0 : i32
    %c0_i32_0 = arith.constant 0 : i32
    %c0_i32_1 = arith.constant 0 : i32
    return %c0_i32, %c0_i32_0 : i32, i32
  }
  func.func @transform_2(%arg0: i32) -> (i32, i32) {
    %c0_i32 = arith.constant 0 : i32
    %c0_i32_0 = arith.constant 0 : i32
    %c0_i32_1 = arith.constant 0 : i32
    return %c0_i32, %c0_i32_0 : i32, i32
  }
  func.func @transform_3(%arg0: i32) -> (i32, i32) {
    %c0_i32 = arith.constant 0 : i32
    %c0_i32_0 = arith.constant 0 : i32
    %c0_i32_1 = arith.constant 0 : i32
    return %c0_i32, %c0_i32_0 : i32, i32
  }
  func.func @transform_4(%arg0: i32) -> (i32, i32) {
    %c0_i32 = arith.constant 0 : i32
    %c0_i32_0 = arith.constant 0 : i32
    %c0_i32_1 = arith.constant 0 : i32
    return %c0_i32, %c0_i32_0 : i32, i32
  }
  func.func @transform_5(%arg0: i32) -> (i32, i32) {
    %c0_i32 = arith.constant 0 : i32
    %c0_i32_0 = arith.constant 0 : i32
    %c0_i32_1 = arith.constant 0 : i32
    return %c0_i32, %c0_i32_0 : i32, i32
  }
  func.func @transform_6(%arg0: i32) -> (i32, i32) {
    %c0_i32 = arith.constant 0 : i32
    %c0_i32_0 = arith.constant 0 : i32
    %c0_i32_1 = arith.constant 0 : i32
    return %c0_i32, %c0_i32_0 : i32, i32
  }
  func.func @transform_7(%arg0: i32) -> (i32, i32) {
    %c0_i32 = arith.constant 0 : i32
    %c0_i32_0 = arith.constant 0 : i32
    return %c0_i32, %arg0 : i32, i32
  }
}

</mosaic_0001>

<bundles_post_ra>
// kernel: tpu_custom_call.1
= control target key start
LH: loop header
LB: loop body
LE: loop exit
PB: predicated region body
PF: predicated region fallthrough
CT: control target
= control target key end

     0   :  { %12 = vsyncpa [#allocation3], 0  ;;  %s697_s0 = inlined_call_operand.vmem [shape: bf16[8,112], index: 0, kind: input, shape index: {}]   ;;  %s698_s1 = inlined_call_operand.hbm [shape: bf16[112,256], index: 1, kind: input, shape index: {}]   ;;  %s699_s2 = inlined_call_operand.vmem [shape: f32[1,256], index: 2, kind: input, shape index: {}]   ;;  %s700_s3 = inlined_call_operand.hbm [shape: bf16[256,128], index: 3, kind: input, shape index: {}]   ;;  %s701_s4 = inlined_call_operand.vmem [shape: f32[1,128], index: 4, kind: input, shape index: {}]   ;;  %s702_s5 = inlined_call_operand.vmem [shape: bf16[8,128], index: 5, kind: input, shape index: {}]   ;;  %s703_s6 = inlined_call_operand.vmem [shape: f32[8,1], index: 6, kind: input, shape index: {}]   ;;  %s704_s7 = inlined_call_operand.hbm [shape: f32[8,8], index: 7, kind: output, shape index: {}]  }
   0x1   :  { %13 = vsyncpa [#allocation6], 0 }
   0x2   :  { %14 = vsyncpa [#allocation4], 0  ;;  %s21_s26 = sshll.u32 %s698_s1, 4  ;;  %s625_s27 = smov [#allocation2]   ;;  %s22_s26 = int_to_ptr.hbm [resolvable:$true] %s21_s26 }
   0x3   :  { %s23_s28 = sshll.u32 %s625_s27, 4  ;;  %s36_s8 = sshll.u32 %s700_s3, 4  ;;  %s24_s28 = int_to_ptr.vmem [resolvable:$true] %s23_s28  ;;  %s37_s8 = int_to_ptr.hbm [resolvable:$true] %s36_s8 }
   0x4   :  { %s626_s9 = smov 128   ;;  %s627_s10 = smov 8  }
   0x5   :  { %29 = dma.hbm_to_vmem [thread:$0]  %s22_s26, 1792, %s24_s28, [#allocation3], %s626_s9, %s626_s9, %s627_s10  }
   0x6   :  { %s628_s11 = smov [#allocation5]   ;;  %s629_s13 = smov 64  }
   0x7   :  { %s38_s12 = sshll.u32 %s628_s11, 4  ;;  %s630_s14 = smov 4   ;;  %s39_s12 = int_to_ptr.vmem [resolvable:$true] %s38_s12 }
   0x8   :  { %44 = dma.hbm_to_vmem [thread:$0]  %s37_s8, 2048, %s39_s12, [#allocation6], %s629_s13, %s629_s13, %s630_s14  }
   0x9   :  { %619 = dma.done.wait [#allocation3], 1792  }
   0xa   :  { %620 = vsyncadd [#allocation3], 4294965504 }
   0xb   :  { %621 = dma.done.wait [#allocation6], 2048  }
   0xc   :  { %622 = vsyncadd [#allocation6], 4294965248  ;;  %v435_v0 = vld [vmem:[#allocation2 + $0x60] sm:$0xf]  ;;  %v520_v1 = vld [vmem:[#allocation2 + $0x64] sm:$0xf0] }
   0xd   :  { %v519_v2 = vld [vmem:[#allocation2 + $0x64] sm:$0xf]  ;;  %v436_v3 = vor.u32 %v520_v1, %v435_v0  ;;  %v437_v4 = vld [vmem:[#allocation2 + $0x68] sm:$0xf0]  ;;  %v427_v5 = vld [vmem:[#allocation2 + $0x50] sm:$0xf] }
   0xe   :  { %v518_v6 = vld [vmem:[#allocation2 + $0x54] sm:$0xf0]  ;;  %v440_v7 = vor.u32 %v519_v2, %v437_v4  ;;  %v517_v8 = vld [vmem:[#allocation2 + $0x54] sm:$0xf]  ;;  %v429_v9 = vld [vmem:[#allocation2 + $0x58] sm:$0xf0] }
   0xf   :  { %156 = vmatpush.bf16.msra.mxu0 %v436_v3  ;;  %v428_v10 = vor.u32 %v518_v6, %v427_v5  ;;  %v432_v11 = vor.u32 %v517_v8, %v429_v9  ;;  %v419_v12 = vld [vmem:[#allocation2 + $0x40] sm:$0xf]  ;;  %v516_v13 = vld [vmem:[#allocation2 + $0x44] sm:$0xf0]  ;;  %v515_v14 = vld [vmem:[#allocation2 + $0x44] sm:$0xf] }
  0x10   :  { %169 = vmatpush.bf16.msra.mxu1 %v440_v7  ;;  %v421_v15 = vld [vmem:[#allocation2 + $0x48] sm:$0xf0]  ;;  %v420_v16 = vor.u32 %v516_v13, %v419_v12  ;;  %v411_v18 = vld [vmem:[#allocation2 + $0x30] sm:$0xf]  ;;  %v514_v19 = vld [vmem:[#allocation2 + $0x34] sm:$0xf0] }
  0x11   :  { %v424_v17 = vor.u32 %v515_v14, %v421_v15  ;;  %v513_v20 = vld [vmem:[#allocation2 + $0x34] sm:$0xf]  ;;  %v413_v21 = vld [vmem:[#allocation2 + $0x38] sm:$0xf0]  ;;  %v528_v22 = vld [vmem:[#allocation5 + $0x38] sm:$0xff]  ;;  %v412_v24 = vor.u32 %v514_v19, %v411_v18  ;;  %vm151_vm0 = vcmask 916480  }
  0x12   :  { %v536_v23 = vld [vmem:[#allocation5 + $0x78] sm:$0xff]  ;;  %317 = vmatpush.bf16.msra.mxu2 %v528_v22  ;;  %v527_v25 = vld [vmem:[#allocation5 + $0x30] sm:$0xff]  ;;  %v416_v26 = vor.u32 %v513_v20, %v413_v21  ;;  %v526_v33 = vld [vmem:[#allocation5 + $0x28] sm:$0xff]  ;;  %v631_v9 = vmov 0   ;;  %vm365_vm1 = vcmask 64512  }
  0x13   :  { %157 = vmatpush.bf16.msra.mxu0 %v428_v10  ;;  %v403_v27 = vld [vmem:[#allocation2 + $0x20] sm:$0xf]  ;;  %v512_v28 = vld [vmem:[#allocation2 + $0x24] sm:$0xf0]  ;;  %330 = vmatpush.bf16.msra.mxu3 %v536_v23  ;;  %v511_v30 = vld [vmem:[#allocation2 + $0x24] sm:$0xf] }
  0x14   :  { %170 = vmatpush.bf16.msra.mxu1 %v432_v11  ;;  %v535_v29 = vld [vmem:[#allocation5 + $0x70] sm:$0xff]  ;;  %v405_v31 = vld [vmem:[#allocation2 + $0x28] sm:$0xf0]  ;;  %v404_v32 = vor.u32 %v512_v28, %v403_v27  ;;  %v395_v35 = vld [vmem:[#allocation2 + $0x10] sm:$0xf]  ;;  %545 = vset.pattern.permute.xlu0 %v631_v9 }
  0x15   :  { %v408_v34 = vor.u32 %v511_v30, %v405_v31  ;;  %v510_v36 = vld [vmem:[#allocation2 + $0x14] sm:$0xf0]  ;;  %v509_v38 = vld [vmem:[#allocation2 + $0x14] sm:$0xf]  ;;  %v397_v39 = vld [vmem:[#allocation2 + $0x18] sm:$0xf0] }
  0x16   :  { %318 = vmatpush.bf16.msra.mxu2 %v527_v25  ;;  %v534_v37 = vld [vmem:[#allocation5 + $0x68] sm:$0xff]  ;;  %v396_v40 = vor.u32 %v510_v36, %v395_v35  ;;  %v525_v41 = vld [vmem:[#allocation5 + $0x20] sm:$0xff]  ;;  %v400_v42 = vor.u32 %v509_v38, %v397_v39  ;;  %v387_v43 = vld [vmem:[#allocation2] sm:$0xf] }
  0x17   :  { %158 = vmatpush.bf16.msra.mxu0 %v420_v16  ;;  %331 = vmatpush.bf16.msra.mxu3 %v535_v29  ;;  %v508_v44 = vld [vmem:[#allocation2 + $0x4] sm:$0xf0]  ;;  %v533_v45 = vld [vmem:[#allocation5 + $0x60] sm:$0xff]  ;;  %v507_v46 = vld [vmem:[#allocation2 + $0x4] sm:$0xf] }
  0x18   :  { %171 = vmatpush.bf16.msra.mxu1 %v424_v17  ;;  %v389_v47 = vld [vmem:[#allocation2 + $0x8] sm:$0xf0]  ;;  %v388_v48 = vor.u32 %v508_v44, %v387_v43  ;;  %v60_v52 = vld [vmem:[%s697_s0] sm:$0xf]  ;;  %v522_v55 = vld [vmem:[#allocation5 + $0x8] sm:$0xff] }
  0x19   :  { %v524_v49 = vld [vmem:[#allocation5 + $0x18] sm:$0xff]  ;;  %v392_v50 = vor.u32 %v507_v46, %v389_v47  ;;  %v523_v53 = vld [vmem:[#allocation5 + $0x10] sm:$0xff]  ;;  %v530_v56 = vld [vmem:[#allocation5 + $0x48] sm:$0xff] }
  0x1a   :  { %319 = vmatpush.bf16.msra.mxu2 %v526_v33  ;;  %v532_v51 = vld [vmem:[#allocation5 + $0x58] sm:$0xff]  ;;  %v531_v54 = vld [vmem:[#allocation5 + $0x50] sm:$0xff]  ;;  %v521_v57 = vld [vmem:[#allocation5] sm:$0xff] }
  0x1b   :  { %159 = vmatpush.bf16.msra.mxu0 %v412_v24  ;;  %332 = vmatpush.bf16.msra.mxu3 %v534_v37  ;;  %v529_v58 = vld [vmem:[#allocation5 + $0x40] sm:$0xff]  ;;  %v75_v59 = vld [vmem:[%s699_s2] sm:$0x3] }
  0x1c   :  { %172 = vmatpush.bf16.msra.mxu1 %v416_v26  ;;  %v77_v60 = vperm.slane %v75_v59, 0  ;;  %v78_v61 = vperm.slane %v75_v59, 1  ;;  %v346_v8 = vld [vmem:[%s703_s6] sm:$0xff]  ;;  %s632_s6 = smov [#allocation7]  }
  0x1d   :  { %349 = vperm.xlu0 %545, %v346_v8   ;;  %v546_v10 = vld [vmem:[%s701_s4] ss:$0 sm:$0xff]  ;;  %s372_s21 = sshll.u32 %s632_s6, 4  ;;  %s374_s4 = sshll.u32 %s704_s7, 4  ;;  %s373_s21 = int_to_ptr.vmem [resolvable:$true] %s372_s21  ;;  %s375_s4 = int_to_ptr.hbm [resolvable:$true] %s374_s4 }
  0x1e   :  { %320 = vmatpush.bf16.msra.mxu2 %v525_v41  ;;  %v344_v19 = vld [vmem:[%s702_s5] sm:$0xf] }
  0x1f   :  { %160 = vmatpush.bf16.msra.mxu0 %v404_v32  ;;  %333 = vmatpush.bf16.msra.mxu3 %v533_v45 }
  0x20   :  { %173 = vmatpush.bf16.msra.mxu1 %v408_v34 }
  0x22   :  { %321 = vmatpush.bf16.msra.mxu2 %v524_v49 }
  0x23   :  { %161 = vmatpush.bf16.msra.mxu0 %v396_v40  ;;  %334 = vmatpush.bf16.msra.mxu3 %v532_v51 }
  0x24   :  { %174 = vmatpush.bf16.msra.mxu1 %v400_v42 }
  0x26   :  { %322 = vmatpush.bf16.msra.mxu2 %v523_v53 }
  0x27   :  { %162 = vmatpush.bf16.msra.mxu0 %v388_v48  ;;  %335 = vmatpush.bf16.msra.mxu3 %v531_v54 }
  0x28   :  { %175 = vmatpush.bf16.msra.mxu1 %v392_v50 }
  0x2a   :  { %441 = vmatmul.msk.bf16.vlgmr.msra.gmra.mxu0 %vm151_vm0, %v60_v52  ;;  %323 = vmatpush.bf16.msra.mxu2 %v522_v55 }
  0x2b   :  { %442 = vmatmul.msk.bf16.vlgmr.msra.gmra.mxu1 %vm151_vm0, %v60_v52  ;;  %336 = vmatpush.bf16.msra.mxu3 %v530_v56 }
  0x2e   :  { %324 = vmatpush.bf16.msra.mxu2 %v521_v57 }
  0x2f   :  { %337 = vmatpush.bf16.msra.mxu3 %v529_v58 }
  0x8f   :  { %v350_v20 = vpop.permute.xlu0 %349 }
  0xa7   :  { %v164_v62 = vpop.f32.mrf.mxu0 }
  0xa8   :  { %v165_v63 = vadd.f32 %v164_v62, %v77_v60  ;;  %v177_v0 = vpop.f32.mrf.mxu1 }
  0xa9   :  { %v178_v1 = vadd.f32 %v177_v0, %v78_v61 }
  0xaa   :  { %v181_v2 = vmax.f32 %v165_v63, 0.0 }
  0xab   :  { %v182_v3 = vmax.f32 %v178_v1, 0.0 }
  0xac   :  { %v183_v4 = vpack.c.bf16 %v181_v2, %v181_v2 }
  0xad   :  { %v184_v5 = vpack.c.bf16 %v182_v3, %v182_v3 }
  0xae   :  { %325 = vmatmul.bf16.vlgmr.msra.gmra.mxu2 %v183_v4 }
  0xaf   :  { %338 = vmatmul.bf16.vlgmr.msra.gmra.mxu3 %v184_v5  ;;  %v166_v6 = vpop.f32.mrf.mxu0 }
  0xb0   :  { %v179_v7 = vpop.f32.mrf.mxu1 }
 0x131   :  { %v326_v11 = vpop.f32.mrf.mxu2 }
 0x132   :  { %v327_v12 = vadd.f32 %v546_v10, %v326_v11  ;;  %v339_v13 = vpop.f32.mrf.mxu3 }
 0x134   :  { %v340_v14 = vadd.f32 %v339_v13, %v327_v12 }
 0x136   :  { %v343_v15 = vmax.f32 %v340_v14, 0.0 }
 0x138   :  { %v345_v16 = vpack.c.bf16 %v343_v15, %v343_v15 }
 0x139   :  { %v328_v17 = vpop.f32.mrf.mxu2 }
 0x13a   :  { %v341_v18 = vpop.f32.mrf.mxu3  ;;  %359 = vmatpush.bf16.xpose.msrb.mxu0 %v345_v16 }
 0x141   :  { %360 = vmatmul.bf16.vlgmr.msrb.gmra.mxu0 %v344_v19 }
 0x1be   :  { %v361_v21 = vpop.f32.mrf.mxu0 }
 0x1bf   :  { %v362_v22 = vadd.f32 %v361_v21, %v350_v20 }
 0x1c1   :  { %366 = vst.msk [vmem:[#allocation7] sm:$0xff] %vm365_vm1, %v362_v22 }
 0x1c2   :  { %377 = dma.vmem_to_hbm [thread:$0]  %s373_s21, 128, %s375_s4, [#allocation4]  }
 0x1c6   :  { %v363_v23 = vpop.f32.mrf.mxu0 }
 0x1c7   :  { %623 = dma.done.wait [#allocation4], 128  }
 0x1c8   :  { %624 = vsyncadd [#allocation4], 4294967168 }
 0x1c9   :  { %382 = vsyncpa [#allocation3], 1 }
 0x1ca   :  { %383 = vsyncpa [#allocation6], 1 }
 0x1cb   :  { %384 = vsyncpa [#allocation4], 1 }

</bundles_post_ra>
